<compile_context>
chip_gen: v5e
topology: v5e:2x2
jax: 0.10.0
libtpu: 0.0.40
codegen_flags: <defaults>
</compile_context>

<pallas_src>
import functools
import math

import jax
import jax.numpy as jnp
import numpy as np
from jax.experimental import pallas as pl
from jax.experimental.pallas import tpu as pltpu


# ---------------------------------------------------------------------------
# Kernel: one MXU matmul (folded conv + BN scale + mean-over-K) + residual.
# ---------------------------------------------------------------------------
def _downsample_kernel(pn_ref, x_ref, w_ref, shift_ref, out_ref):
    pn = pn_ref[...].astype(w_ref.dtype)               # in-kernel cast (VPU, free)
    acc = jnp.dot(pn, w_ref[...], preferred_element_type=jnp.float32)
    res = x_ref[...].astype(jnp.float32) + acc + shift_ref[...]
    out_ref[...] = res.astype(out_ref.dtype)            # lane-dense store


def _num_tensorcores():
    """Best-effort TensorCores-per-chip query (v7x = 2, v5e/v6e = 1)."""
    try:
        kind = str(getattr(jax.devices()[0], "device_kind", "")).lower()
        return 2 if "v7" in kind else 1
    except Exception:  # pragma: no cover
        return 1


def _pick_group(c_out, k, c_in, *, pn_bytes, x_bytes, out_bytes, compute_dtype,
                max_group=64):
    """Rows packed into the lane axis so stores are 128-lane dense, with a
    roofline guard on the G-fold MXU inflation of the block-diagonal weight
    (most binding on v5e: ~240 bf16 flops/byte balance, f32 matmul ~4x slower)."""
    g = 128 // math.gcd(128, c_out)
    if g > max_group:
        g = max_group
    is_bf16 = np.dtype(compute_dtype) == np.dtype(jnp.bfloat16)
    limit = 180.0 if is_bf16 else 60.0
    while g > 1:
        lanes_in, lanes_out = g * k * c_in, g * c_out
        hbm_bytes = lanes_in * pn_bytes + lanes_out * (x_bytes + out_bytes)
        if 2.0 * lanes_in * lanes_out / hbm_bytes <= limit:
            break
        g //= 2
    return max(g, 1)


def _pick_row_tile(mp_rows, *, bytes_per_row, resident_bytes, num_cores,
                   target, vmem_budget):
    """Row tile for the packed (Mp, lanes) view: sublane-legal (multiple of 8),
    fits a double-buffered VMEM budget, and on multi-TC chips leaves >= 2 grid
    steps per core.  Single-TC chips just take the largest tile."""
    vmem_cap = max(8, (vmem_budget - resident_bytes) // max(1, bytes_per_row))
    tr = min(target, vmem_cap)
    if num_cores > 1:
        min_steps = 2 * num_cores
        tr = min(tr, max(8, -(-mp_rows // min_steps)))
    tr = max(8, (tr // 8) * 8)                      # sublane-legal
    tr = min(tr, max(8, -(-mp_rows // 8) * 8))      # never exceed padded rows
    return tr


def downsample_forward(x, point_neighbor, w4, conv_bias, gamma, beta,
                       running_mean, running_var, *, eps=1e-5,
                       compute_dtype=jnp.bfloat16, out_dtype=None,
                       row_tile_target=2048, num_cores=None,
                       vmem_budget_bytes=24 * 1024 * 1024):
    """Channels-last Downsample forward (eval-mode BatchNorm folded)."""
    B, N, K, C_in = point_neighbor.shape
    C_out = w4.shape[-1]
    assert x.shape == (B, N, C_out)
    assert K >= 2, "folded 'same'-pad conv taps assume at least 2 neighbours"
    if out_dtype is None:
        out_dtype = x.dtype
    if num_cores is None:
        num_cores = _num_tensorcores()
    M = B * N

    # ---- fold conv(1,4,'same') + eval-mode BN + mean-over-K into one weight --
    # mean_k conv depends only on sum_k pn, pn[0], pn[1], pn[K-1]; per-k rows:
    #   w_fold[k] = (W0+W1+W2+W3 - [k==0](W2+W3) - [k==1]W3 - [k==K-1]W0)*scale/K
    scale = (gamma / jnp.sqrt(running_var + eps)).astype(jnp.float32)
    shift = (scale * (conv_bias - running_mean) + beta).astype(jnp.float32)

    w4f = w4.astype(jnp.float32)
    w_per_k = jnp.tile(jnp.sum(w4f, axis=0)[None], (K, 1, 1))   # (K, C_in, C_out)
    w_per_k = w_per_k.at[0].add(-(w4f[2] + w4f[3]))
    w_per_k = w_per_k.at[1].add(-w4f[3])
    w_per_k = w_per_k.at[K - 1].add(-w4f[0])
    w_fold = (w_per_k * scale[None, None, :] / K).reshape(K * C_in, C_out)

    # ---- lane-dense packing + generation-aware tiling -------------------------
    pn_bytes = np.dtype(point_neighbor.dtype).itemsize
    x_bytes = np.dtype(x.dtype).itemsize
    out_bytes = np.dtype(out_dtype).itemsize
    w_bytes_per_elt = np.dtype(compute_dtype).itemsize

    G = _pick_group(C_out, K, C_in, pn_bytes=pn_bytes, x_bytes=x_bytes,
                    out_bytes=out_bytes, compute_dtype=compute_dtype)
    lanes_in, lanes_out = G * K * C_in, G * C_out

    bytes_per_packed_row = 2 * (lanes_in * pn_bytes
                                + lanes_out * (x_bytes + out_bytes))
    w_resident = 2 * lanes_in * lanes_out * w_bytes_per_elt + 4 * lanes_out
    mp_rows = -(-M // G)
    tr = _pick_row_tile(mp_rows, bytes_per_row=bytes_per_packed_row,
                        resident_bytes=w_resident, num_cores=num_cores,
                        target=row_tile_target, vmem_budget=vmem_budget_bytes)
    Mp = -(-mp_rows // tr) * tr          # packed rows padded to the tile
    M_pad = Mp * G

    # Block-diagonal folded weight (tiny, built at trace time, VMEM-resident).
    w_bd = jnp.einsum('gh,jc->gjhc', jnp.eye(G, dtype=jnp.float32),
                      w_fold).reshape(lanes_in, lanes_out).astype(compute_dtype)
    shift_w = jnp.tile(shift, (G,)).reshape(1, lanes_out)

    # Native-dtype, row-major (free) reshapes — NO wrapper-side astype copies.
    # Zero-pad rows only when the shape doesn't divide (pad rows are sliced off).
    pn_flat = point_neighbor.reshape(M, K * C_in)
    x_flat = x.reshape(M, C_out)
    if M_pad != M:
        pn_flat = jnp.pad(pn_flat, ((0, M_pad - M), (0, 0)))
        x_flat = jnp.pad(x_flat, ((0, M_pad - M), (0, 0)))
    pn_w = pn_flat.reshape(Mp, lanes_in)
    x_w = x_flat.reshape(Mp, lanes_out)

    out = pl.pallas_call(
        _downsample_kernel,
        out_shape=jax.ShapeDtypeStruct((Mp, lanes_out), out_dtype),
        grid_spec=pltpu.PrefetchScalarGridSpec(
            num_scalar_prefetch=0,
            grid=(Mp // tr,),
            in_specs=[
                pl.BlockSpec((tr, lanes_in), lambda i: (i, 0)),         # pn stream
                pl.BlockSpec((tr, lanes_out), lambda i: (i, 0)),        # residual x
                pl.BlockSpec((lanes_in, lanes_out), lambda i: (0, 0)),  # folded W
                pl.BlockSpec((1, lanes_out), lambda i: (0, 0)),         # shift
            ],
            out_specs=pl.BlockSpec((tr, lanes_out), lambda i: (i, 0)),
        ),
        compiler_params=pltpu.CompilerParams(
            dimension_semantics=("parallel",),
            vmem_limit_bytes=32 * 1024 * 1024),
    )(pn_w, x_w, w_bd, shift_w)

    return out.reshape(M_pad, C_out)[:M].reshape(B, N, C_out)


def downsample_reference(x, pn, w4, conv_bias, gamma, beta, rmean, rvar,
                         eps=1e-5):
    """Plain-JAX reference mirroring the PyTorch forward (eval-mode BN)."""
    B, N, K, C_in = pn.shape
    pn_pad = jnp.pad(pn, ((0, 0), (0, 0), (1, 2), (0, 0)))
    conv = sum(jnp.einsum('bnkc,cd->bnkd', pn_pad[:, :, t:t + K, :], w4[t])
               for t in range(4)) + conv_bias
    y = gamma * (conv - rmean) / jnp.sqrt(rvar + eps) + beta
    return x + jnp.mean(y, axis=2)


if __name__ == "__main__":
    B, N, K, C_in, C_out = 2, 256, 8, 4, 8

    key = jax.random.PRNGKey(0)
    ks = jax.random.split(key, 8)
    x = jax.random.normal(ks[0], (B, N, C_out), jnp.float32)
    point_neighbor = jax.random.normal(ks[1], (B, N, K, C_in), jnp.float32)

    # Conv2d weight (C_out, C_in, 1, 4) stored here as (4, C_in, C_out);
    # BatchNorm2d parameters per C_out channel.
    w4 = 0.1 * jax.random.normal(ks[2], (4, C_in, C_out), jnp.float32)
    conv_bias = 0.1 * jax.random.normal(ks[3], (C_out,), jnp.float32)
    gamma = 1.0 + 0.1 * jax.random.normal(ks[4], (C_out,), jnp.float32)
    beta = 0.1 * jax.random.normal(ks[5], (C_out,), jnp.float32)
    running_mean = 0.1 * jax.random.normal(ks[6], (C_out,), jnp.float32)
    running_var = jnp.abs(1.0 + 0.1 * jax.random.normal(ks[7], (C_out,),
                                                        jnp.float32))

    ref = np.asarray(downsample_reference(x, point_neighbor, w4, conv_bias,
                                          gamma, beta, running_mean,
                                          running_var))

    # Exact-semantics check: f32 compute path.
    fwd_f32 = jax.jit(functools.partial(downsample_forward,
                                        compute_dtype=jnp.float32))
    out_f32 = jax.block_until_ready(
        fwd_f32(x, point_neighbor, w4, conv_bias, gamma, beta,
                running_mean, running_var))
    assert out_f32.shape == ref.shape
    err32 = float(np.max(np.abs(np.asarray(out_f32) - ref)))
    assert np.allclose(np.asarray(out_f32), ref, atol=1e-4, rtol=1e-4), \
        f"f32 path max abs err {err32}"

    # Default path: bf16 MXU inputs cast in-kernel (no wrapper-side copies),
    # output dtype follows x (f32 here).
    fwd_bf16 = jax.jit(downsample_forward)
    out_bf16 = jax.block_until_ready(
        fwd_bf16(x, point_neighbor, w4, conv_bias, gamma, beta,
                 running_mean, running_var))
    errbf = float(np.max(np.abs(np.asarray(out_bf16) - ref)))
    assert np.allclose(np.asarray(out_bf16), ref, atol=5e-2, rtol=5e-2), \
        f"bf16 path max abs err {errbf}"

    print("KERNEL_OK")
</pallas_src>

<mosaic_0001>
module attributes {stable_mosaic.version = 11 : i64} {
  func.func @_downsample_kernel(%arg0: i32, %arg1: memref<32x512xf32, #tpu.memory_space<vmem>>, %arg2: memref<32x128xf32, #tpu.memory_space<vmem>>, %arg3: memref<512x128xf32, #tpu.memory_space<vmem>>, %arg4: memref<1x128xf32, #tpu.memory_space<vmem>>, %arg5: memref<32x128xf32, #tpu.memory_space<vmem>>) attributes {dimension_semantics = [#tpu.dimension_semantics<parallel>], iteration_bounds = array<i64: 1>, scalar_prefetch = 0 : i64, scratch_operands = 0 : i64, tpu.core_type = #tpu.core_type<tc>, window_params = [{transform_indices = @transform_0, window_bounds = array<i64: 32, 512>}, {transform_indices = @transform_1, window_bounds = array<i64: 32, 128>}, {pipeline_mode = #tpu.pipeline_mode<synchronous>, transform_indices = @transform_2, window_bounds = array<i64: 512, 128>}, {pipeline_mode = #tpu.pipeline_mode<synchronous>, transform_indices = @transform_3, window_bounds = array<i64: 1, 128>}, {transform_indices = @transform_4, window_bounds = array<i64: 32, 128>}]} {
    %c0 = arith.constant 0 : index
    %c0_0 = arith.constant 0 : index
    %0 = vector.load %arg1[%c0, %c0_0] : memref<32x512xf32, #tpu.memory_space<vmem>>, vector<32x512xf32>
    %c0_1 = arith.constant 0 : index
    %c0_2 = arith.constant 0 : index
    %1 = vector.load %arg3[%c0_1, %c0_2] : memref<512x128xf32, #tpu.memory_space<vmem>>, vector<512x128xf32>
    %cst = arith.constant dense<0.000000e+00> : vector<32x128xf32>
    %2 = tpu.matmul %0, %1, %cst {dimension_numbers = #tpu.dot_dimension_numbers<[1], [0], [0], [1], [0, 0, 1, 1], [], []>} : vector<32x512xf32>, vector<512x128xf32>, vector<32x128xf32> -> vector<32x128xf32>
    %c0_3 = arith.constant 0 : index
    %c0_4 = arith.constant 0 : index
    %3 = vector.load %arg2[%c0_3, %c0_4] : memref<32x128xf32, #tpu.memory_space<vmem>>, vector<32x128xf32>
    %4 = arith.addf %3, %2 : vector<32x128xf32>
    %c0_5 = arith.constant 0 : index
    %c0_6 = arith.constant 0 : index
    %5 = vector.load %arg4[%c0_5, %c0_6] : memref<1x128xf32, #tpu.memory_space<vmem>>, vector<1x128xf32>
    %6 = vector.broadcast %5 : vector<1x128xf32> to vector<32x128xf32>
    %7 = arith.addf %4, %6 : vector<32x128xf32>
    %c0_7 = arith.constant 0 : index
    %c0_8 = arith.constant 0 : index
    %8 = vector.load %arg5[%c0_7, %c0_8] : memref<32x128xf32, #tpu.memory_space<vmem>>, vector<32x128xf32>
    tpu.vector_store %arg5[%c0_7, %c0_8], %7 {strides = array<i32>} : memref<32x128xf32, #tpu.memory_space<vmem>>, vector<32x128xf32>,
    return
  }
  func.func @transform_0(%arg0: i32) -> (i32, i32) {
    %c0_i32 = arith.constant 0 : i32
    %c0_i32_0 = arith.constant 0 : i32
    return %arg0, %c0_i32 : i32, i32
  }
  func.func @transform_1(%arg0: i32) -> (i32, i32) {
    %c0_i32 = arith.constant 0 : i32
    %c0_i32_0 = arith.constant 0 : i32
    return %arg0, %c0_i32 : i32, i32
  }
  func.func @transform_2(%arg0: i32) -> (i32, i32) {
    %c0_i32 = arith.constant 0 : i32
    %c0_i32_0 = arith.constant 0 : i32
    %c0_i32_1 = arith.constant 0 : i32
    return %c0_i32, %c0_i32_0 : i32, i32
  }
  func.func @transform_3(%arg0: i32) -> (i32, i32) {
    %c0_i32 = arith.constant 0 : i32
    %c0_i32_0 = arith.constant 0 : i32
    %c0_i32_1 = arith.constant 0 : i32
    return %c0_i32, %c0_i32_0 : i32, i32
  }
  func.func @transform_4(%arg0: i32) -> (i32, i32) {
    %c0_i32 = arith.constant 0 : i32
    %c0_i32_0 = arith.constant 0 : i32
    return %arg0, %c0_i32 : i32, i32
  }
}

</mosaic_0001>

<bundles_post_ra>
// kernel: tile.16
= control target key start
LH: loop header
LB: loop body
LE: loop exit
PB: predicated region body
PF: predicated region fallthrough
CT: control target
= control target key end

     0   :  { %s28_s0 = inlined_call_operand.vmem [shape: f32[8], index: 0, kind: input, shape index: {}]   ;;  %s29_s1 = inlined_call_operand.vmem [shape: f32[16,8], index: 1, kind: output, shape index: {}]  }
   0x1   :  { %v4_v0 = vld [vmem:[%s28_s0] ss:$0 sm:$0xff] }
   0x2   :  { %5 = vst [vmem:[%s29_s1] sm:$0xff] %v4_v0 }
   0x3   :  { %8 = vst [vmem:[%s29_s1 + $0x8] sm:$0xff] %v4_v0 }

// kernel: tile.17
= control target key start
LH: loop header
LB: loop body
LE: loop exit
PB: predicated region body
PF: predicated region fallthrough
CT: control target
= control target key end

     0   :  { %s131_s10 = smov 120   ;;  %s132_s11 = smov 104   ;;  %vm3_vm0 = vcmask 64512   ;;  %vm9_vm1 = vcmask 1048512   ;;  %vm15_vm2 = vcmask 982912   ;;  %vm21_vm3 = vcmask 917312   ;;  %s207_s0 = inlined_call_operand.vmem [shape: f32[16,8], index: 0, kind: input, shape index: {}]   ;;  %s208_s1 = inlined_call_operand.vmem [shape: f32[1,128], index: 1, kind: output, shape index: {}]  }
   0x1   :  { %v101_v0 = vld [vmem:[%s207_s0 + $0xf] sm:$0x1]   ;;  %v103_v1 = vld [vmem:[%s207_s0 + $0xd] sm:$0x1]   ;;  %v105_v2 = vld [vmem:[%s207_s0 + $0xb] sm:$0x1]  }
   0x2   :  { %7 = vrot.lane.b32.xlu0 %v101_v0, %s131_s10  ;;  %19 = vrot.lane.b32.xlu1 %v103_v1, %s132_s11  ;;  %s133_s14 = smov 88   ;;  %v102_v3 = vld [vmem:[%s207_s0 + $0xe] sm:$0x1]   ;;  %v104_v4 = vld [vmem:[%s207_s0 + $0xc] sm:$0x1]   ;;  %s134_s19 = smov 112  }
   0x3   :  { %31 = vrot.lane.b32.xlu2 %v105_v2, %s133_s14  ;;  %s135_s20 = smov 96   ;;  %v106_v5 = vld [vmem:[%s207_s0 + $0xa] sm:$0x1]   ;;  %s136_s23 = smov 80   ;;  %v107_v6 = vld [vmem:[%s207_s0 + $0x9] sm:$0x1]  }
   0x4   :  { %v108_v7 = vld [vmem:[%s207_s0 + $0x8] sm:$0x1]   ;;  %s137_s28 = smov 72   ;;  %s138_s29 = smov 64   ;;  %v109_v8 = vld [vmem:[%s207_s0 + $0x7] sm:$0x1]  }
   0x5   :  { %s139_s3 = smov 56   ;;  %v110_v9 = vld [vmem:[%s207_s0 + $0x6] sm:$0x1]   ;;  %v111_v10 = vld [vmem:[%s207_s0 + $0x5] sm:$0x1]   ;;  %s140_s8 = smov 48  }
   0x6   :  { %s141_s9 = smov 40   ;;  %v112_v11 = vld [vmem:[%s207_s0 + $0x4] sm:$0x1]   ;;  %s142_s12 = smov 32   ;;  %v113_v12 = vld [vmem:[%s207_s0 + $0x3] sm:$0x1]  }
   0x7   :  { %v114_v13 = vld [vmem:[%s207_s0 + $0x2] sm:$0x1]   ;;  %s143_s17 = smov 24   ;;  %s144_s18 = smov 16   ;;  %v115_v14 = vld [vmem:[%s207_s0 + $0x1] sm:$0x1]  }
   0x8   :  { %s145_s21 = smov 8   ;;  %v2_v15 = vld [vmem:[%s207_s0] sm:$0x1]   ;;  %vm27_vm4 = vcmask 851712   ;;  %vm33_vm5 = vcmask 786112   ;;  %vm39_vm6 = vcmask 720512  }
   0x9   :  { %4 = vst.msk [vmem:[#allocation0] sm:$0x1] %vm3_vm0, %v2_v15   ;;  %vm45_vm7 = vcmask 654912   ;;  %vm51_vm8 = vcmask 589312   ;;  %vm57_vm9 = vcmask 523712   ;;  %vm63_vm10 = vcmask 458112  }
   0xa   :  { %13 = vrot.lane.b32.xlu0 %v102_v3, %s134_s19  ;;  %25 = vrot.lane.b32.xlu1 %v104_v4, %s135_s20  ;;  %vm69_vm11 = vcmask 392512   ;;  %vm75_vm12 = vcmask 326912   ;;  %vm81_vm13 = vcmask 261312   ;;  %vm87_vm14 = vcmask 195712  }
   0xb   :  { %37 = vrot.lane.b32.xlu2 %v106_v5, %s136_s23  ;;  %vm93_vm15 = vcmask 130112  }
  0x12   :  { %43 = vrot.lane.b32.xlu0 %v107_v6, %s137_s28  ;;  %49 = vrot.lane.b32.xlu1 %v108_v7, %s138_s29 }
  0x13   :  { %55 = vrot.lane.b32.xlu2 %v109_v8, %s139_s3 }
  0x1a   :  { %61 = vrot.lane.b32.xlu0 %v110_v9, %s140_s8  ;;  %67 = vrot.lane.b32.xlu1 %v111_v10, %s141_s9 }
  0x1b   :  { %73 = vrot.lane.b32.xlu2 %v112_v11, %s142_s12 }
  0x22   :  { %79 = vrot.lane.b32.xlu0 %v113_v12, %s143_s17  ;;  %85 = vrot.lane.b32.xlu1 %v114_v13, %s144_s18 }
  0x23   :  { %91 = vrot.lane.b32.xlu2 %v115_v14, %s145_s21 }
  0x5d   :  { %v32_v16 = vpop.permute.xlu2 %31  }
  0x65   :  { %v38_v17 = vpop.permute.xlu2 %37  }
  0x6d   :  { %v56_v18 = vpop.permute.xlu2 %55  }
  0x74   :  { %v8_v19 = vpop.permute.xlu0 %7   ;;  %v20_v20 = vpop.permute.xlu1 %19  }
  0x75   :  { %10 = vst.msk [vmem:[#allocation0] sm:$0x1] %vm9_vm1, %v8_v19   ;;  %v74_v21 = vpop.permute.xlu2 %73  }
  0x7c   :  { %v14_v22 = vpop.permute.xlu0 %13   ;;  %v26_v23 = vpop.permute.xlu1 %25  }
  0x7d   :  { %16 = vst.msk [vmem:[#allocation0] sm:$0x1] %vm15_vm2, %v14_v22   ;;  %v92_v24 = vpop.permute.xlu2 %91  }
  0x7e   :  { %22 = vst.msk [vmem:[#allocation0] sm:$0x1] %vm21_vm3, %v20_v20  }
  0x7f   :  { %28 = vst.msk [vmem:[#allocation0] sm:$0x1] %vm27_vm4, %v26_v23  }
  0x80   :  { %34 = vst.msk [vmem:[#allocation0] sm:$0x1] %vm33_vm5, %v32_v16  }
  0x81   :  { %40 = vst.msk [vmem:[#allocation0] sm:$0x1] %vm39_vm6, %v38_v17  }
  0x84   :  { %v44_v25 = vpop.permute.xlu0 %43   ;;  %v50_v26 = vpop.permute.xlu1 %49  }
  0x85   :  { %46 = vst.msk [vmem:[#allocation0] sm:$0x1] %vm45_vm7, %v44_v25  }
  0x86   :  { %52 = vst.msk [vmem:[#allocation0] sm:$0x1] %vm51_vm8, %v50_v26  }
  0x87   :  { %58 = vst.msk [vmem:[#allocation0] sm:$0x1] %vm57_vm9, %v56_v18  }
  0x8c   :  { %v62_v27 = vpop.permute.xlu0 %61   ;;  %v68_v28 = vpop.permute.xlu1 %67  }
  0x8d   :  { %64 = vst.msk [vmem:[#allocation0] sm:$0x1] %vm63_vm10, %v62_v27  }
  0x8e   :  { %70 = vst.msk [vmem:[#allocation0] sm:$0x1] %vm69_vm11, %v68_v28  }
  0x8f   :  { %76 = vst.msk [vmem:[#allocation0] sm:$0x1] %vm75_vm12, %v74_v21  }
  0x94   :  { %v80_v29 = vpop.permute.xlu0 %79   ;;  %v86_v30 = vpop.permute.xlu1 %85  }
  0x95   :  { %82 = vst.msk [vmem:[#allocation0] sm:$0x1] %vm81_vm13, %v80_v29  }
  0x96   :  { %88 = vst.msk [vmem:[#allocation0] sm:$0x1] %vm87_vm14, %v86_v30  }
  0x97   :  { %94 = vst.msk [vmem:[#allocation0] sm:$0x1] %vm93_vm15, %v92_v24  }
  0x9e   :  { %v97_v31 = vld [vmem:[#allocation0] sm:$0x1] }
  0x9f   :  { %100 = vst [vmem:[%s208_s1] sm:$0x1] %v97_v31 }

// kernel: downsample_forward.1
= control target key start
LH: loop header
LB: loop body
LE: loop exit
PB: predicated region body
PF: predicated region fallthrough
CT: control target
= control target key end

     0   :  { %s530_s2 = inlined_call_operand.vmem [shape: f32[512,128], index: 2, kind: input, shape index: {}]   ;;  %s531_s0 = inlined_call_operand.vmem [shape: f32[32,512], index: 0, kind: input, shape index: {}]   ;;  %s532_s3 = inlined_call_operand.vmem [shape: f32[1,128], index: 3, kind: input, shape index: {}]   ;;  %s533_s1 = inlined_call_operand.vmem [shape: f32[32,128], index: 1, kind: input, shape index: {}]   ;;  %s534_s4 = inlined_call_operand.vmem [shape: f32[32,128], index: 4, kind: output, shape index: {}]  }
   0x1   :  { %v80_v0 = vld [vmem:[%s530_s2 + $0x178] sm:$0xff]  ;;  %v79_v1 = vld [vmem:[%s530_s2 + $0x170] sm:$0xff]  ;;  %v78_v5 = vld [vmem:[%s530_s2 + $0x168] sm:$0xff] }
   0x2   :  { %v96_v2 = vld [vmem:[%s530_s2 + $0x1f8] sm:$0xff]  ;;  %155 = vmatpush.msra.mxu2 %v80_v0  ;;  %v95_v6 = vld [vmem:[%s530_s2 + $0x1f0] sm:$0xff]  ;;  %v94_v9 = vld [vmem:[%s530_s2 + $0x1e8] sm:$0xff] }
   0x3   :  { %184 = vmatpush.msra.mxu3 %v96_v2  ;;  %v48_v3 = vld [vmem:[%s530_s2 + $0x78] sm:$0xff]  ;;  %v47_v7 = vld [vmem:[%s530_s2 + $0x70] sm:$0xff]  ;;  %v46_v10 = vld [vmem:[%s530_s2 + $0x68] sm:$0xff] }
   0x4   :  { %v64_v4 = vld [vmem:[%s530_s2 + $0xf8] sm:$0xff]  ;;  %97 = vmatpush.msra.mxu0 %v48_v3  ;;  %v63_v8 = vld [vmem:[%s530_s2 + $0xf0] sm:$0xff]  ;;  %156 = vmatpush.msra.mxu2 %v79_v1  ;;  %v77_v11 = vld [vmem:[%s530_s2 + $0x160] sm:$0xff] }
   0x5   :  { %126 = vmatpush.msra.mxu1 %v64_v4  ;;  %185 = vmatpush.msra.mxu3 %v95_v6  ;;  %v62_v12 = vld [vmem:[%s530_s2 + $0xe8] sm:$0xff]  ;;  %v93_v13 = vld [vmem:[%s530_s2 + $0x1e0] sm:$0xff]  ;;  %v76_v16 = vld [vmem:[%s530_s2 + $0x158] sm:$0xff] }
   0x6   :  { %98 = vmatpush.msra.mxu0 %v47_v7  ;;  %157 = vmatpush.msra.mxu2 %v78_v5  ;;  %v45_v14 = vld [vmem:[%s530_s2 + $0x60] sm:$0xff]  ;;  %v92_v17 = vld [vmem:[%s530_s2 + $0x1d8] sm:$0xff]  ;;  %v75_v20 = vld [vmem:[%s530_s2 + $0x150] sm:$0xff] }
   0x7   :  { %127 = vmatpush.msra.mxu1 %v63_v8  ;;  %186 = vmatpush.msra.mxu3 %v94_v9  ;;  %v61_v15 = vld [vmem:[%s530_s2 + $0xe0] sm:$0xff]  ;;  %v44_v18 = vld [vmem:[%s530_s2 + $0x58] sm:$0xff]  ;;  %v91_v21 = vld [vmem:[%s530_s2 + $0x1d0] sm:$0xff] }
   0x8   :  { %99 = vmatpush.msra.mxu0 %v46_v10  ;;  %158 = vmatpush.msra.mxu2 %v77_v11  ;;  %v60_v19 = vld [vmem:[%s530_s2 + $0xd8] sm:$0xff]  ;;  %v43_v22 = vld [vmem:[%s530_s2 + $0x50] sm:$0xff]  ;;  %v74_v24 = vld [vmem:[%s530_s2 + $0x148] sm:$0xff] }
   0x9   :  { %128 = vmatpush.msra.mxu1 %v62_v12  ;;  %187 = vmatpush.msra.mxu3 %v93_v13  ;;  %v59_v23 = vld [vmem:[%s530_s2 + $0xd0] sm:$0xff]  ;;  %v90_v25 = vld [vmem:[%s530_s2 + $0x1c8] sm:$0xff]  ;;  %v73_v28 = vld [vmem:[%s530_s2 + $0x140] sm:$0xff] }
   0xa   :  { %100 = vmatpush.msra.mxu0 %v45_v14  ;;  %159 = vmatpush.msra.mxu2 %v76_v16  ;;  %v42_v26 = vld [vmem:[%s530_s2 + $0x48] sm:$0xff]  ;;  %v89_v29 = vld [vmem:[%s530_s2 + $0x1c0] sm:$0xff]  ;;  %v72_v32 = vld [vmem:[%s530_s2 + $0x138] sm:$0xff] }
   0xb   :  { %129 = vmatpush.msra.mxu1 %v61_v15  ;;  %188 = vmatpush.msra.mxu3 %v92_v17  ;;  %v58_v27 = vld [vmem:[%s530_s2 + $0xc8] sm:$0xff]  ;;  %v41_v30 = vld [vmem:[%s530_s2 + $0x40] sm:$0xff]  ;;  %v88_v33 = vld [vmem:[%s530_s2 + $0x1b8] sm:$0xff] }
   0xc   :  { %101 = vmatpush.msra.mxu0 %v44_v18  ;;  %160 = vmatpush.msra.mxu2 %v75_v20  ;;  %v57_v31 = vld [vmem:[%s530_s2 + $0xc0] sm:$0xff]  ;;  %v40_v34 = vld [vmem:[%s530_s2 + $0x38] sm:$0xff]  ;;  %v71_v36 = vld [vmem:[%s530_s2 + $0x130] sm:$0xff] }
   0xd   :  { %130 = vmatpush.msra.mxu1 %v60_v19  ;;  %189 = vmatpush.msra.mxu3 %v91_v21  ;;  %v56_v35 = vld [vmem:[%s530_s2 + $0xb8] sm:$0xff]  ;;  %v87_v37 = vld [vmem:[%s530_s2 + $0x1b0] sm:$0xff]  ;;  %v70_v40 = vld [vmem:[%s530_s2 + $0x128] sm:$0xff] }
   0xe   :  { %102 = vmatpush.msra.mxu0 %v43_v22  ;;  %161 = vmatpush.msra.mxu2 %v74_v24  ;;  %v39_v38 = vld [vmem:[%s530_s2 + $0x30] sm:$0xff]  ;;  %v86_v41 = vld [vmem:[%s530_s2 + $0x1a8] sm:$0xff]  ;;  %v69_v44 = vld [vmem:[%s530_s2 + $0x120] sm:$0xff] }
   0xf   :  { %131 = vmatpush.msra.mxu1 %v59_v23  ;;  %190 = vmatpush.msra.mxu3 %v90_v25  ;;  %v55_v39 = vld [vmem:[%s530_s2 + $0xb0] sm:$0xff]  ;;  %v38_v42 = vld [vmem:[%s530_s2 + $0x28] sm:$0xff]  ;;  %v85_v45 = vld [vmem:[%s530_s2 + $0x1a0] sm:$0xff] }
  0x10   :  { %103 = vmatpush.msra.mxu0 %v42_v26  ;;  %162 = vmatpush.msra.mxu2 %v73_v28  ;;  %v54_v43 = vld [vmem:[%s530_s2 + $0xa8] sm:$0xff]  ;;  %v37_v46 = vld [vmem:[%s530_s2 + $0x20] sm:$0xff]  ;;  %v68_v48 = vld [vmem:[%s530_s2 + $0x118] sm:$0xff] }
  0x11   :  { %132 = vmatpush.msra.mxu1 %v58_v27  ;;  %191 = vmatpush.msra.mxu3 %v89_v29  ;;  %v53_v47 = vld [vmem:[%s530_s2 + $0xa0] sm:$0xff]  ;;  %v84_v49 = vld [vmem:[%s530_s2 + $0x198] sm:$0xff]  ;;  %v67_v52 = vld [vmem:[%s530_s2 + $0x110] sm:$0xff] }
  0x12   :  { %104 = vmatpush.msra.mxu0 %v41_v30  ;;  %163 = vmatpush.msra.mxu2 %v72_v32  ;;  %v36_v50 = vld [vmem:[%s530_s2 + $0x18] sm:$0xff]  ;;  %v83_v53 = vld [vmem:[%s530_s2 + $0x190] sm:$0xff]  ;;  %v66_v56 = vld [vmem:[%s530_s2 + $0x108] sm:$0xff] }
  0x13   :  { %133 = vmatpush.msra.mxu1 %v57_v31  ;;  %192 = vmatpush.msra.mxu3 %v88_v33  ;;  %v52_v51 = vld [vmem:[%s530_s2 + $0x98] sm:$0xff]  ;;  %v35_v54 = vld [vmem:[%s530_s2 + $0x10] sm:$0xff]  ;;  %v82_v57 = vld [vmem:[%s530_s2 + $0x188] sm:$0xff] }
  0x14   :  { %105 = vmatpush.msra.mxu0 %v40_v34  ;;  %164 = vmatpush.msra.mxu2 %v71_v36  ;;  %v51_v55 = vld [vmem:[%s530_s2 + $0x90] sm:$0xff]  ;;  %v34_v58 = vld [vmem:[%s530_s2 + $0x8] sm:$0xff]  ;;  %v65_v60 = vld [vmem:[%s530_s2 + $0x100] sm:$0xff] }
  0x15   :  { %134 = vmatpush.msra.mxu1 %v56_v35  ;;  %193 = vmatpush.msra.mxu3 %v87_v37  ;;  %v50_v59 = vld [vmem:[%s530_s2 + $0x88] sm:$0xff]  ;;  %v81_v61 = vld [vmem:[%s530_s2 + $0x180] sm:$0xff]  ;;  %v19_v62 = vld [vmem:[%s531_s0 + $0x10] sm:$0xff] }
  0x16   :  { %106 = vmatpush.msra.mxu0 %v39_v38  ;;  %165 = vmatpush.msra.mxu2 %v70_v40  ;;  %v20_v63 = vld [vmem:[%s531_s0 + $0x18] sm:$0xff]  ;;  %v33_v0 = vld [vmem:[%s530_s2] sm:$0xff]  ;;  %v18_v3 = vld [vmem:[%s531_s0 + $0x8] sm:$0xff] }
  0x17   :  { %135 = vmatpush.msra.mxu1 %v55_v39  ;;  %194 = vmatpush.msra.mxu3 %v86_v41  ;;  %v49_v1 = vld [vmem:[%s530_s2 + $0x80] sm:$0xff]  ;;  %v23_v4 = vld [vmem:[%s531_s0 + $0x30] sm:$0xff]  ;;  %v24_v5 = vld [vmem:[%s531_s0 + $0x38] sm:$0xff] }
  0x18   :  { %107 = vmatpush.msra.mxu0 %v38_v42  ;;  %166 = vmatpush.msra.mxu2 %v69_v44  ;;  %v17_v2 = vld [vmem:[%s531_s0] sm:$0xff]  ;;  %v22_v7 = vld [vmem:[%s531_s0 + $0x28] sm:$0xff]  ;;  %v27_v8 = vld [vmem:[%s531_s0 + $0x50] sm:$0xff] }
  0x19   :  { %136 = vmatpush.msra.mxu1 %v54_v43  ;;  %195 = vmatpush.msra.mxu3 %v85_v45  ;;  %v21_v6 = vld [vmem:[%s531_s0 + $0x20] sm:$0xff]  ;;  %v28_v9 = vld [vmem:[%s531_s0 + $0x58] sm:$0xff]  ;;  %v26_v11 = vld [vmem:[%s531_s0 + $0x48] sm:$0xff] }
  0x1a   :  { %108 = vmatpush.msra.mxu0 %v37_v46  ;;  %167 = vmatpush.msra.mxu2 %v68_v48  ;;  %v25_v10 = vld [vmem:[%s531_s0 + $0x40] sm:$0xff]  ;;  %v31_v12 = vld [vmem:[%s531_s0 + $0x70] sm:$0xff]  ;;  %v32_v13 = vld [vmem:[%s531_s0 + $0x78] sm:$0xff] }
  0x1b   :  { %137 = vmatpush.msra.mxu1 %v53_v47  ;;  %196 = vmatpush.msra.mxu3 %v84_v49  ;;  %v29_v14 = vld [vmem:[%s531_s0 + $0x60] sm:$0xff]  ;;  %v30_v15 = vld [vmem:[%s531_s0 + $0x68] sm:$0xff]  ;;  %v215_v43 = vld [vmem:[%s533_s1 + $0x10] sm:$0xff] }
  0x1c   :  { %109 = vmatpush.msra.mxu0 %v36_v50  ;;  %168 = vmatpush.msra.mxu2 %v67_v52  ;;  %v213_v22 = vld [vmem:[%s533_s1] sm:$0xff]  ;;  %v214_v33 = vld [vmem:[%s533_s1 + $0x8] sm:$0xff] }
  0x1d   :  { %138 = vmatpush.msra.mxu1 %v52_v51  ;;  %197 = vmatpush.msra.mxu3 %v83_v53  ;;  %v237_v24 = vld [vmem:[%s532_s3] ss:$0 sm:$0xff]  ;;  %v216_v53 = vld [vmem:[%s533_s1 + $0x18] sm:$0xff] }
  0x1e   :  { %110 = vmatpush.msra.mxu0 %v35_v54  ;;  %169 = vmatpush.msra.mxu2 %v66_v56 }
  0x1f   :  { %139 = vmatpush.msra.mxu1 %v51_v55  ;;  %198 = vmatpush.msra.mxu3 %v82_v57 }
  0x20   :  { %111 = vmatpush.msra.mxu0 %v34_v58  ;;  %170 = vmatpush.msra.mxu2 %v65_v60 }
  0x21   :  { %140 = vmatpush.msra.mxu1 %v50_v59  ;;  %199 = vmatpush.msra.mxu3 %v81_v61 }
  0x22   :  { %171 = vmatmul.f32.vlgmr.msra.gmra.mxu2 %v19_v62  ;;  %200 = vmatmul.f32.vlgmr.msra.gmra.mxu3 %v20_v63 }
  0x23   :  { %112 = vmatpush.msra.mxu0 %v33_v0  ;;  %141 = vmatpush.msra.mxu1 %v49_v1 }
  0x24   :  { %113 = vmatmul.f32.vlgmr.msra.gmra.mxu0 %v17_v2  ;;  %142 = vmatmul.f32.vlgmr.msra.gmra.mxu1 %v18_v3 }
  0x2a   :  { %174 = vmatmul.f32.gmra.mxu2 %v23_v4  ;;  %203 = vmatmul.f32.gmra.mxu3 %v24_v5 }
  0x2c   :  { %116 = vmatmul.f32.gmra.mxu0 %v21_v6  ;;  %145 = vmatmul.f32.gmra.mxu1 %v22_v7 }
  0x32   :  { %177 = vmatmul.f32.gmra.mxu2 %v27_v8  ;;  %206 = vmatmul.f32.gmra.mxu3 %v28_v9 }
  0x34   :  { %119 = vmatmul.f32.gmra.mxu0 %v25_v10  ;;  %148 = vmatmul.f32.gmra.mxu1 %v26_v11 }
  0x3a   :  { %180 = vmatmul.f32.gmra.mxu2 %v31_v12  ;;  %209 = vmatmul.f32.gmra.mxu3 %v32_v13 }
  0x3c   :  { %122 = vmatmul.f32.gmra.mxu0 %v29_v14  ;;  %151 = vmatmul.f32.gmra.mxu1 %v30_v15 }
  0xa1   :  { %v114_v16 = vpop.f32.mrf.mxu0  ;;  %v143_v17 = vpop.f32.mrf.mxu1 }
  0xa2   :  { %v144_v18 = vadd.f32 %v143_v17, %v114_v16 }
  0xa5   :  { %v172_v19 = vpop.f32.mrf.mxu2  ;;  %v201_v20 = vpop.f32.mrf.mxu3 }
  0xa6   :  { %v173_v21 = vadd.f32 %v172_v19, %v144_v18 }
  0xa8   :  { %v202_v23 = vadd.f32 %v201_v20, %v173_v21 }
  0xa9   :  { %v117_v25 = vpop.f32.mrf.mxu0  ;;  %v146_v26 = vpop.f32.mrf.mxu1 }
  0xaa   :  { %v217_v27 = vadd.f32 %v213_v22, %v202_v23  ;;  %v147_v28 = vadd.f32 %v146_v26, %v117_v25 }
  0xac   :  { %v225_v29 = vadd.f32 %v237_v24, %v217_v27 }
  0xad   :  { %v175_v30 = vpop.f32.mrf.mxu2  ;;  %v204_v31 = vpop.f32.mrf.mxu3 }
  0xae   :  { %229 = vst [vmem:[%s534_s4] sm:$0xff] %v225_v29  ;;  %v176_v32 = vadd.f32 %v175_v30, %v147_v28 }
  0xb0   :  { %v205_v34 = vadd.f32 %v204_v31, %v176_v32 }
  0xb1   :  { %v120_v35 = vpop.f32.mrf.mxu0  ;;  %v149_v36 = vpop.f32.mrf.mxu1 }
  0xb2   :  { %v218_v37 = vadd.f32 %v214_v33, %v205_v34  ;;  %v150_v38 = vadd.f32 %v149_v36, %v120_v35 }
  0xb4   :  { %v226_v39 = vadd.f32 %v237_v24, %v218_v37 }
  0xb5   :  { %v178_v40 = vpop.f32.mrf.mxu2  ;;  %v207_v41 = vpop.f32.mrf.mxu3 }
  0xb6   :  { %230 = vst [vmem:[%s534_s4 + $0x8] sm:$0xff] %v226_v39  ;;  %v179_v42 = vadd.f32 %v178_v40, %v150_v38 }
  0xb8   :  { %v208_v44 = vadd.f32 %v207_v41, %v179_v42 }
  0xb9   :  { %v123_v45 = vpop.f32.mrf.mxu0  ;;  %v152_v46 = vpop.f32.mrf.mxu1 }
  0xba   :  { %v219_v47 = vadd.f32 %v215_v43, %v208_v44  ;;  %v153_v48 = vadd.f32 %v152_v46, %v123_v45 }
  0xbc   :  { %v227_v49 = vadd.f32 %v237_v24, %v219_v47 }
  0xbd   :  { %v181_v50 = vpop.f32.mrf.mxu2  ;;  %v210_v51 = vpop.f32.mrf.mxu3 }
  0xbe   :  { %231 = vst [vmem:[%s534_s4 + $0x10] sm:$0xff] %v227_v49  ;;  %v182_v52 = vadd.f32 %v181_v50, %v153_v48 }
  0xc0   :  { %v211_v54 = vadd.f32 %v210_v51, %v182_v52 }
  0xc2   :  { %v220_v55 = vadd.f32 %v216_v53, %v211_v54 }
  0xc4   :  { %v228_v56 = vadd.f32 %v237_v24, %v220_v55 }
  0xc6   :  { %232 = vst [vmem:[%s534_s4 + $0x18] sm:$0xff] %v228_v56 }

</bundles_post_ra>
